<compile_context>
chip_gen: v7x
topology: tpu7x:2x2x1
jax: 0.10.0
libtpu: 0.0.40
codegen_flags: <defaults>
</compile_context>

<pallas_src>
import jax
import jax.numpy as jnp
from jax import lax
from jax.experimental import pallas as pl
from jax.experimental.pallas import tpu as pltpu


def _round_up(n, m):
    return ((n + m - 1) // m) * m


def _gru_kernel(xp_ref,   # (S, Bt, 2*Hp) f32 : precomputed x_t @ Wx + b, all timesteps
                wh_ref,   # (Hp, 2*Hp)    bf16: fused [Whz | Whh] recurrent weights
                wfc_ref,  # (Hp, Op)      bf16: zero-padded fc weight
                bfc_ref,  # (1, Op)       f32 : zero-padded fc bias
                y_ref):   # (Bt, Op)      f32 : output (final fc fused here)
    S, Bt, _ = xp_ref.shape
    Hp = wh_ref.shape[0]

    wh = wh_ref[...]                          # load recurrent weights once
    h0 = jnp.zeros((Bt, Hp), jnp.float32)

    def step(t, h):
        # pre-activations = hoisted input projection (+bias) + h @ Wh_fused
        pre = xp_ref[t] + jnp.dot(h.astype(jnp.bfloat16), wh,
                                  preferred_element_type=jnp.float32)
        z = jax.nn.sigmoid(pre[:, :Hp])       # update gate   (lane-aligned slice)
        h_tilde = jnp.tanh(pre[:, Hp:])       # candidate     (lane-aligned slice)
        return (1.0 - z) * h + z * h_tilde    # same update rule as the reference

    h = lax.fori_loop(0, S, step, h0, unroll=True)

    # Fused final linear layer (lane-dense (Bt, Op) store).
    y_ref[...] = (jnp.dot(h.astype(jnp.bfloat16), wfc_ref[...],
                          preferred_element_type=jnp.float32)
                  + bfc_ref[...])


@jax.jit
def gru_forward(x, params):
    """x: (batch, seq, input_size) float32. Returns (batch, output_size)."""
    W_r, b_r, W_z, b_z, W_h, b_h, W_fc, b_fc = params
    B, S, I = x.shape
    H = W_z.shape[1]
    O = W_fc.shape[1]

    Hp = _round_up(H, 128)          # lane-dense hidden width
    Op = _round_up(O, 128)          # lane-dense output width
    G = 2 * Hp                      # fused gate width: [z | h_tilde]

    # The reference forward computes a reset gate r from W_r/b_r but never
    # applies it -> dead code; drop it (output is unchanged).
    del W_r, b_r

    # Split concat weights into input/hidden halves, fuse z & h_tilde gates,
    # zero-pad to lane-dense widths.  Pad lanes of h stay exactly zero:
    # z_pad = sigmoid(0) = 0.5, h_tilde_pad = tanh(0) = 0, h0_pad = 0.
    Wx = jnp.zeros((I, G), jnp.float32)
    Wx = Wx.at[:, :H].set(W_z[:I]).at[:, Hp:Hp + H].set(W_h[:I])
    Wh = jnp.zeros((Hp, G), jnp.float32)
    Wh = Wh.at[:H, :H].set(W_z[I:]).at[:H, Hp:Hp + H].set(W_h[I:])
    b = jnp.zeros((1, G), jnp.float32)
    b = b.at[0, :H].set(b_z).at[0, Hp:Hp + H].set(b_h)
    Wfc = jnp.zeros((Hp, Op), jnp.float32).at[:H, :O].set(W_fc)
    bfc = jnp.zeros((1, Op), jnp.float32).at[0, :O].set(b_fc)

    # Hoist the input projection out of the serial recurrence: one big matmul
    # over all B*S rows, biases folded in (bf16 operands, f32 accumulation).
    xp = jnp.dot(x.reshape(B * S, I).astype(jnp.bfloat16),
                 Wx.astype(jnp.bfloat16),
                 preferred_element_type=jnp.float32) + b
    xp = xp.reshape(B, S, G).transpose(1, 0, 2)          # (S, B, G) seq-major

    Bt = B   # one batch tile at this size; grid axis is "parallel" for v7x
    y_pad = pl.pallas_call(
        _gru_kernel,
        out_shape=jax.ShapeDtypeStruct((B, Op), jnp.float32),
        grid=(B // Bt,),
        in_specs=[
            pl.BlockSpec((S, Bt, G), lambda i: (0, i, 0)),   # hoisted x-projection
            pl.BlockSpec((Hp, G), lambda i: (0, 0)),         # fused recurrent weights
            pl.BlockSpec((Hp, Op), lambda i: (0, 0)),        # fc weight (padded)
            pl.BlockSpec((1, Op), lambda i: (0, 0)),         # fc bias (padded)
        ],
        out_specs=pl.BlockSpec((Bt, Op), lambda i: (i, 0)),
        compiler_params=pltpu.CompilerParams(
            dimension_semantics=("parallel",)),
    )(xp, Wh.astype(jnp.bfloat16), Wfc.astype(jnp.bfloat16), bfc)

    return y_pad[:, :O]


def gru_reference(x, params):
    """Pure-JAX f32 mirror of the PyTorch forward (for verification)."""
    W_r, b_r, W_z, b_z, W_h, b_h, W_fc, b_fc = params
    B, S, I = x.shape
    H = W_z.shape[1]
    h = jnp.zeros((B, H), jnp.float32)
    for t in range(S):
        x_t = x[:, t, :]
        combined = jnp.concatenate([x_t, h], axis=1)
        r = jax.nn.sigmoid(combined @ W_r + b_r)  # noqa: F841  (computed but unused, as in reference)
        z = jax.nn.sigmoid(combined @ W_z + b_z)
        h_tilde = jnp.tanh(combined @ W_h + b_h)
        h = (1.0 - z) * h + z * h_tilde
    return h @ W_fc + b_fc


def init_params(key, input_size, hidden_size, output_size):
    ks = jax.random.split(key, 5)
    # PyTorch: W_* ~ randn, b_* = 0, fc = nn.Linear (uniform(-1/sqrt(H), 1/sqrt(H)))
    W_r = jax.random.normal(ks[0], (input_size + hidden_size, hidden_size), jnp.float32)
    W_z = jax.random.normal(ks[1], (input_size + hidden_size, hidden_size), jnp.float32)
    W_h = jax.random.normal(ks[2], (input_size + hidden_size, hidden_size), jnp.float32)
    b_r = jnp.zeros((hidden_size,), jnp.float32)
    b_z = jnp.zeros((hidden_size,), jnp.float32)
    b_h = jnp.zeros((hidden_size,), jnp.float32)
    bound = 1.0 / jnp.sqrt(hidden_size)
    W_fc = jax.random.uniform(ks[3], (hidden_size, output_size), jnp.float32, -bound, bound)
    b_fc = jax.random.uniform(ks[4], (output_size,), jnp.float32, -bound, bound)
    return (W_r, b_r, W_z, b_z, W_h, b_h, W_fc, b_fc)


if __name__ == "__main__":
    batch, seq_len = 2, 8
    input_size, hidden_size, output_size = 16, 32, 8

    key = jax.random.PRNGKey(0)
    k_x, k_p = jax.random.split(key)
    x = jax.random.normal(k_x, (batch, seq_len, input_size), jnp.float32)
    params = init_params(k_p, input_size, hidden_size, output_size)

    y = gru_forward(x, params)
    jax.block_until_ready(y)

    y_ref = gru_reference(x, params)
    assert y.shape == (batch, output_size)
    # bf16 MXU operands (f32 accumulation) per perf review -> ~1e-2 relative
    # error vs. the pure-f32 reference; tolerance loosened accordingly.
    assert jnp.allclose(y, y_ref, atol=1e-1, rtol=1e-1), (
        f"mismatch: max abs err {jnp.max(jnp.abs(y - y_ref))}")

    print("KERNEL_OK")
</pallas_src>

<mosaic_0001>
module attributes {stable_mosaic.version = 11 : i64} {
  func.func @_gru_kernel(%arg0: i32, %arg1: memref<8x2x256xf32, #tpu.memory_space<vmem>>, %arg2: memref<128x256xbf16, #tpu.memory_space<vmem>>, %arg3: memref<128x128xbf16, #tpu.memory_space<vmem>>, %arg4: memref<1x128xf32, #tpu.memory_space<vmem>>, %arg5: memref<2x128xf32, #tpu.memory_space<vmem>>) attributes {dimension_semantics = [#tpu.dimension_semantics<parallel>], iteration_bounds = array<i64: 1>, scalar_prefetch = 0 : i64, scratch_operands = 0 : i64, tpu.core_type = #tpu.core_type<tc>, window_params = [{transform_indices = @transform_0, window_bounds = array<i64: 8, 2, 256>}, {pipeline_mode = #tpu.pipeline_mode<synchronous>, transform_indices = @transform_1, window_bounds = array<i64: 128, 256>}, {pipeline_mode = #tpu.pipeline_mode<synchronous>, transform_indices = @transform_2, window_bounds = array<i64: 128, 128>}, {pipeline_mode = #tpu.pipeline_mode<synchronous>, transform_indices = @transform_3, window_bounds = array<i64: 1, 128>}, {transform_indices = @transform_4, window_bounds = array<i64: 2, 128>}]} {
    %c0 = arith.constant 0 : index
    %c0_0 = arith.constant 0 : index
    %0 = vector.load %arg2[%c0, %c0_0] : memref<128x256xbf16, #tpu.memory_space<vmem>>, vector<128x256xbf16>
    %cst = arith.constant 0.000000e+00 : f32
    %1 = vector.broadcast %cst : f32 to vector<2x128xf32>
    %c0_i32 = arith.constant 0 : i32
    %2 = arith.index_cast %c0_i32 : i32 to index
    %c0_1 = arith.constant 0 : index
    %c0_2 = arith.constant 0 : index
    %3 = vector.load %arg1[%2, %c0_1, %c0_2] : memref<8x2x256xf32, #tpu.memory_space<vmem>>, vector<1x2x256xf32>
    %4 = vector.shape_cast %3 : vector<1x2x256xf32> to vector<2x256xf32>
    %5 = arith.truncf %1 : vector<2x128xf32> to vector<2x128xbf16>
    %cst_3 = arith.constant dense<0.000000e+00> : vector<2x256xf32>
    %6 = tpu.matmul %5, %0, %cst_3 {dimension_numbers = #tpu.dot_dimension_numbers<[1], [0], [0], [1], [0, 0, 1, 1], [], []>} : vector<2x128xbf16>, vector<128x256xbf16>, vector<2x256xf32> -> vector<2x256xf32>
    %7 = arith.addf %4, %6 : vector<2x256xf32>
    %8 = vector.extract_strided_slice %7 {offsets = [0, 0], sizes = [2, 128], strides = [1, 1]} : vector<2x256xf32> to vector<2x128xf32>
    %9 = arith.negf %8 : vector<2x128xf32>
    %10 = math.exp %9 : vector<2x128xf32>
    %cst_4 = arith.constant 1.000000e+00 : f32
    %11 = vector.broadcast %cst_4 : f32 to vector<2x128xf32>
    %12 = arith.addf %11, %10 : vector<2x128xf32>
    %13 = arith.divf %11, %12 : vector<2x128xf32>
    %14 = vector.extract_strided_slice %7 {offsets = [0, 128], sizes = [2, 128], strides = [1, 1]} : vector<2x256xf32> to vector<2x128xf32>
    %15 = math.tanh %14 : vector<2x128xf32>
    %cst_5 = arith.constant 1.000000e+00 : f32
    %16 = vector.broadcast %cst_5 : f32 to vector<2x128xf32>
    %17 = arith.subf %16, %13 : vector<2x128xf32>
    %18 = arith.mulf %17, %1 : vector<2x128xf32>
    %19 = arith.mulf %13, %15 : vector<2x128xf32>
    %20 = arith.addf %18, %19 : vector<2x128xf32>
    %c1_i32 = arith.constant 1 : i32
    %21 = arith.index_cast %c1_i32 : i32 to index
    %c0_6 = arith.constant 0 : index
    %c0_7 = arith.constant 0 : index
    %22 = vector.load %arg1[%21, %c0_6, %c0_7] : memref<8x2x256xf32, #tpu.memory_space<vmem>>, vector<1x2x256xf32>
    %23 = vector.shape_cast %22 : vector<1x2x256xf32> to vector<2x256xf32>
    %24 = arith.truncf %20 : vector<2x128xf32> to vector<2x128xbf16>
    %cst_8 = arith.constant dense<0.000000e+00> : vector<2x256xf32>
    %25 = tpu.matmul %24, %0, %cst_8 {dimension_numbers = #tpu.dot_dimension_numbers<[1], [0], [0], [1], [0, 0, 1, 1], [], []>} : vector<2x128xbf16>, vector<128x256xbf16>, vector<2x256xf32> -> vector<2x256xf32>
    %26 = arith.addf %23, %25 : vector<2x256xf32>
    %27 = vector.extract_strided_slice %26 {offsets = [0, 0], sizes = [2, 128], strides = [1, 1]} : vector<2x256xf32> to vector<2x128xf32>
    %28 = arith.negf %27 : vector<2x128xf32>
    %29 = math.exp %28 : vector<2x128xf32>
    %cst_9 = arith.constant 1.000000e+00 : f32
    %30 = vector.broadcast %cst_9 : f32 to vector<2x128xf32>
    %31 = arith.addf %30, %29 : vector<2x128xf32>
    %32 = arith.divf %30, %31 : vector<2x128xf32>
    %33 = vector.extract_strided_slice %26 {offsets = [0, 128], sizes = [2, 128], strides = [1, 1]} : vector<2x256xf32> to vector<2x128xf32>
    %34 = math.tanh %33 : vector<2x128xf32>
    %cst_10 = arith.constant 1.000000e+00 : f32
    %35 = vector.broadcast %cst_10 : f32 to vector<2x128xf32>
    %36 = arith.subf %35, %32 : vector<2x128xf32>
    %37 = arith.mulf %36, %20 : vector<2x128xf32>
    %38 = arith.mulf %32, %34 : vector<2x128xf32>
    %39 = arith.addf %37, %38 : vector<2x128xf32>
    %c2_i32 = arith.constant 2 : i32
    %40 = arith.index_cast %c2_i32 : i32 to index
    %c0_11 = arith.constant 0 : index
    %c0_12 = arith.constant 0 : index
    %41 = vector.load %arg1[%40, %c0_11, %c0_12] : memref<8x2x256xf32, #tpu.memory_space<vmem>>, vector<1x2x256xf32>
    %42 = vector.shape_cast %41 : vector<1x2x256xf32> to vector<2x256xf32>
    %43 = arith.truncf %39 : vector<2x128xf32> to vector<2x128xbf16>
    %cst_13 = arith.constant dense<0.000000e+00> : vector<2x256xf32>
    %44 = tpu.matmul %43, %0, %cst_13 {dimension_numbers = #tpu.dot_dimension_numbers<[1], [0], [0], [1], [0, 0, 1, 1], [], []>} : vector<2x128xbf16>, vector<128x256xbf16>, vector<2x256xf32> -> vector<2x256xf32>
    %45 = arith.addf %42, %44 : vector<2x256xf32>
    %46 = vector.extract_strided_slice %45 {offsets = [0, 0], sizes = [2, 128], strides = [1, 1]} : vector<2x256xf32> to vector<2x128xf32>
    %47 = arith.negf %46 : vector<2x128xf32>
    %48 = math.exp %47 : vector<2x128xf32>
    %cst_14 = arith.constant 1.000000e+00 : f32
    %49 = vector.broadcast %cst_14 : f32 to vector<2x128xf32>
    %50 = arith.addf %49, %48 : vector<2x128xf32>
    %51 = arith.divf %49, %50 : vector<2x128xf32>
    %52 = vector.extract_strided_slice %45 {offsets = [0, 128], sizes = [2, 128], strides = [1, 1]} : vector<2x256xf32> to vector<2x128xf32>
    %53 = math.tanh %52 : vector<2x128xf32>
    %cst_15 = arith.constant 1.000000e+00 : f32
    %54 = vector.broadcast %cst_15 : f32 to vector<2x128xf32>
    %55 = arith.subf %54, %51 : vector<2x128xf32>
    %56 = arith.mulf %55, %39 : vector<2x128xf32>
    %57 = arith.mulf %51, %53 : vector<2x128xf32>
    %58 = arith.addf %56, %57 : vector<2x128xf32>
    %c3_i32 = arith.constant 3 : i32
    %59 = arith.index_cast %c3_i32 : i32 to index
    %c0_16 = arith.constant 0 : index
    %c0_17 = arith.constant 0 : index
    %60 = vector.load %arg1[%59, %c0_16, %c0_17] : memref<8x2x256xf32, #tpu.memory_space<vmem>>, vector<1x2x256xf32>
    %61 = vector.shape_cast %60 : vector<1x2x256xf32> to vector<2x256xf32>
    %62 = arith.truncf %58 : vector<2x128xf32> to vector<2x128xbf16>
    %cst_18 = arith.constant dense<0.000000e+00> : vector<2x256xf32>
    %63 = tpu.matmul %62, %0, %cst_18 {dimension_numbers = #tpu.dot_dimension_numbers<[1], [0], [0], [1], [0, 0, 1, 1], [], []>} : vector<2x128xbf16>, vector<128x256xbf16>, vector<2x256xf32> -> vector<2x256xf32>
    %64 = arith.addf %61, %63 : vector<2x256xf32>
    %65 = vector.extract_strided_slice %64 {offsets = [0, 0], sizes = [2, 128], strides = [1, 1]} : vector<2x256xf32> to vector<2x128xf32>
    %66 = arith.negf %65 : vector<2x128xf32>
    %67 = math.exp %66 : vector<2x128xf32>
    %cst_19 = arith.constant 1.000000e+00 : f32
    %68 = vector.broadcast %cst_19 : f32 to vector<2x128xf32>
    %69 = arith.addf %68, %67 : vector<2x128xf32>
    %70 = arith.divf %68, %69 : vector<2x128xf32>
    %71 = vector.extract_strided_slice %64 {offsets = [0, 128], sizes = [2, 128], strides = [1, 1]} : vector<2x256xf32> to vector<2x128xf32>
    %72 = math.tanh %71 : vector<2x128xf32>
    %cst_20 = arith.constant 1.000000e+00 : f32
    %73 = vector.broadcast %cst_20 : f32 to vector<2x128xf32>
    %74 = arith.subf %73, %70 : vector<2x128xf32>
    %75 = arith.mulf %74, %58 : vector<2x128xf32>
    %76 = arith.mulf %70, %72 : vector<2x128xf32>
    %77 = arith.addf %75, %76 : vector<2x128xf32>
    %c4_i32 = arith.constant 4 : i32
    %78 = arith.index_cast %c4_i32 : i32 to index
    %c0_21 = arith.constant 0 : index
    %c0_22 = arith.constant 0 : index
    %79 = vector.load %arg1[%78, %c0_21, %c0_22] : memref<8x2x256xf32, #tpu.memory_space<vmem>>, vector<1x2x256xf32>
    %80 = vector.shape_cast %79 : vector<1x2x256xf32> to vector<2x256xf32>
    %81 = arith.truncf %77 : vector<2x128xf32> to vector<2x128xbf16>
    %cst_23 = arith.constant dense<0.000000e+00> : vector<2x256xf32>
    %82 = tpu.matmul %81, %0, %cst_23 {dimension_numbers = #tpu.dot_dimension_numbers<[1], [0], [0], [1], [0, 0, 1, 1], [], []>} : vector<2x128xbf16>, vector<128x256xbf16>, vector<2x256xf32> -> vector<2x256xf32>
    %83 = arith.addf %80, %82 : vector<2x256xf32>
    %84 = vector.extract_strided_slice %83 {offsets = [0, 0], sizes = [2, 128], strides = [1, 1]} : vector<2x256xf32> to vector<2x128xf32>
    %85 = arith.negf %84 : vector<2x128xf32>
    %86 = math.exp %85 : vector<2x128xf32>
    %cst_24 = arith.constant 1.000000e+00 : f32
    %87 = vector.broadcast %cst_24 : f32 to vector<2x128xf32>
    %88 = arith.addf %87, %86 : vector<2x128xf32>
    %89 = arith.divf %87, %88 : vector<2x128xf32>
    %90 = vector.extract_strided_slice %83 {offsets = [0, 128], sizes = [2, 128], strides = [1, 1]} : vector<2x256xf32> to vector<2x128xf32>
    %91 = math.tanh %90 : vector<2x128xf32>
    %cst_25 = arith.constant 1.000000e+00 : f32
    %92 = vector.broadcast %cst_25 : f32 to vector<2x128xf32>
    %93 = arith.subf %92, %89 : vector<2x128xf32>
    %94 = arith.mulf %93, %77 : vector<2x128xf32>
    %95 = arith.mulf %89, %91 : vector<2x128xf32>
    %96 = arith.addf %94, %95 : vector<2x128xf32>
    %c5_i32 = arith.constant 5 : i32
    %97 = arith.index_cast %c5_i32 : i32 to index
    %c0_26 = arith.constant 0 : index
    %c0_27 = arith.constant 0 : index
    %98 = vector.load %arg1[%97, %c0_26, %c0_27] : memref<8x2x256xf32, #tpu.memory_space<vmem>>, vector<1x2x256xf32>
    %99 = vector.shape_cast %98 : vector<1x2x256xf32> to vector<2x256xf32>
    %100 = arith.truncf %96 : vector<2x128xf32> to vector<2x128xbf16>
    %cst_28 = arith.constant dense<0.000000e+00> : vector<2x256xf32>
    %101 = tpu.matmul %100, %0, %cst_28 {dimension_numbers = #tpu.dot_dimension_numbers<[1], [0], [0], [1], [0, 0, 1, 1], [], []>} : vector<2x128xbf16>, vector<128x256xbf16>, vector<2x256xf32> -> vector<2x256xf32>
    %102 = arith.addf %99, %101 : vector<2x256xf32>
    %103 = vector.extract_strided_slice %102 {offsets = [0, 0], sizes = [2, 128], strides = [1, 1]} : vector<2x256xf32> to vector<2x128xf32>
    %104 = arith.negf %103 : vector<2x128xf32>
    %105 = math.exp %104 : vector<2x128xf32>
    %cst_29 = arith.constant 1.000000e+00 : f32
    %106 = vector.broadcast %cst_29 : f32 to vector<2x128xf32>
    %107 = arith.addf %106, %105 : vector<2x128xf32>
    %108 = arith.divf %106, %107 : vector<2x128xf32>
    %109 = vector.extract_strided_slice %102 {offsets = [0, 128], sizes = [2, 128], strides = [1, 1]} : vector<2x256xf32> to vector<2x128xf32>
    %110 = math.tanh %109 : vector<2x128xf32>
    %cst_30 = arith.constant 1.000000e+00 : f32
    %111 = vector.broadcast %cst_30 : f32 to vector<2x128xf32>
    %112 = arith.subf %111, %108 : vector<2x128xf32>
    %113 = arith.mulf %112, %96 : vector<2x128xf32>
    %114 = arith.mulf %108, %110 : vector<2x128xf32>
    %115 = arith.addf %113, %114 : vector<2x128xf32>
    %c6_i32 = arith.constant 6 : i32
    %116 = arith.index_cast %c6_i32 : i32 to index
    %c0_31 = arith.constant 0 : index
    %c0_32 = arith.constant 0 : index
    %117 = vector.load %arg1[%116, %c0_31, %c0_32] : memref<8x2x256xf32, #tpu.memory_space<vmem>>, vector<1x2x256xf32>
    %118 = vector.shape_cast %117 : vector<1x2x256xf32> to vector<2x256xf32>
    %119 = arith.truncf %115 : vector<2x128xf32> to vector<2x128xbf16>
    %cst_33 = arith.constant dense<0.000000e+00> : vector<2x256xf32>
    %120 = tpu.matmul %119, %0, %cst_33 {dimension_numbers = #tpu.dot_dimension_numbers<[1], [0], [0], [1], [0, 0, 1, 1], [], []>} : vector<2x128xbf16>, vector<128x256xbf16>, vector<2x256xf32> -> vector<2x256xf32>
    %121 = arith.addf %118, %120 : vector<2x256xf32>
    %122 = vector.extract_strided_slice %121 {offsets = [0, 0], sizes = [2, 128], strides = [1, 1]} : vector<2x256xf32> to vector<2x128xf32>
    %123 = arith.negf %122 : vector<2x128xf32>
    %124 = math.exp %123 : vector<2x128xf32>
    %cst_34 = arith.constant 1.000000e+00 : f32
    %125 = vector.broadcast %cst_34 : f32 to vector<2x128xf32>
    %126 = arith.addf %125, %124 : vector<2x128xf32>
    %127 = arith.divf %125, %126 : vector<2x128xf32>
    %128 = vector.extract_strided_slice %121 {offsets = [0, 128], sizes = [2, 128], strides = [1, 1]} : vector<2x256xf32> to vector<2x128xf32>
    %129 = math.tanh %128 : vector<2x128xf32>
    %cst_35 = arith.constant 1.000000e+00 : f32
    %130 = vector.broadcast %cst_35 : f32 to vector<2x128xf32>
    %131 = arith.subf %130, %127 : vector<2x128xf32>
    %132 = arith.mulf %131, %115 : vector<2x128xf32>
    %133 = arith.mulf %127, %129 : vector<2x128xf32>
    %134 = arith.addf %132, %133 : vector<2x128xf32>
    %c7_i32 = arith.constant 7 : i32
    %135 = arith.index_cast %c7_i32 : i32 to index
    %c0_36 = arith.constant 0 : index
    %c0_37 = arith.constant 0 : index
    %136 = vector.load %arg1[%135, %c0_36, %c0_37] : memref<8x2x256xf32, #tpu.memory_space<vmem>>, vector<1x2x256xf32>
    %137 = vector.shape_cast %136 : vector<1x2x256xf32> to vector<2x256xf32>
    %138 = arith.truncf %134 : vector<2x128xf32> to vector<2x128xbf16>
    %cst_38 = arith.constant dense<0.000000e+00> : vector<2x256xf32>
    %139 = tpu.matmul %138, %0, %cst_38 {dimension_numbers = #tpu.dot_dimension_numbers<[1], [0], [0], [1], [0, 0, 1, 1], [], []>} : vector<2x128xbf16>, vector<128x256xbf16>, vector<2x256xf32> -> vector<2x256xf32>
    %140 = arith.addf %137, %139 : vector<2x256xf32>
    %141 = vector.extract_strided_slice %140 {offsets = [0, 0], sizes = [2, 128], strides = [1, 1]} : vector<2x256xf32> to vector<2x128xf32>
    %142 = arith.negf %141 : vector<2x128xf32>
    %143 = math.exp %142 : vector<2x128xf32>
    %cst_39 = arith.constant 1.000000e+00 : f32
    %144 = vector.broadcast %cst_39 : f32 to vector<2x128xf32>
    %145 = arith.addf %144, %143 : vector<2x128xf32>
    %146 = arith.divf %144, %145 : vector<2x128xf32>
    %147 = vector.extract_strided_slice %140 {offsets = [0, 128], sizes = [2, 128], strides = [1, 1]} : vector<2x256xf32> to vector<2x128xf32>
    %148 = math.tanh %147 : vector<2x128xf32>
    %cst_40 = arith.constant 1.000000e+00 : f32
    %149 = vector.broadcast %cst_40 : f32 to vector<2x128xf32>
    %150 = arith.subf %149, %146 : vector<2x128xf32>
    %151 = arith.mulf %150, %134 : vector<2x128xf32>
    %152 = arith.mulf %146, %148 : vector<2x128xf32>
    %153 = arith.addf %151, %152 : vector<2x128xf32>
    %c8_i32 = arith.constant 8 : i32
    %154 = arith.truncf %153 : vector<2x128xf32> to vector<2x128xbf16>
    %c0_41 = arith.constant 0 : index
    %c0_42 = arith.constant 0 : index
    %155 = vector.load %arg3[%c0_41, %c0_42] : memref<128x128xbf16, #tpu.memory_space<vmem>>, vector<128x128xbf16>
    %cst_43 = arith.constant dense<0.000000e+00> : vector<2x128xf32>
    %156 = tpu.matmul %154, %155, %cst_43 {dimension_numbers = #tpu.dot_dimension_numbers<[1], [0], [0], [1], [0, 0, 1, 1], [], []>} : vector<2x128xbf16>, vector<128x128xbf16>, vector<2x128xf32> -> vector<2x128xf32>
    %c0_44 = arith.constant 0 : index
    %c0_45 = arith.constant 0 : index
    %157 = vector.load %arg4[%c0_44, %c0_45] : memref<1x128xf32, #tpu.memory_space<vmem>>, vector<1x128xf32>
    %158 = vector.broadcast %157 : vector<1x128xf32> to vector<2x128xf32>
    %159 = arith.addf %156, %158 : vector<2x128xf32>
    %c0_46 = arith.constant 0 : index
    %c0_47 = arith.constant 0 : index
    %160 = vector.load %arg5[%c0_46, %c0_47] : memref<2x128xf32, #tpu.memory_space<vmem>>, vector<2x128xf32>
    tpu.vector_store %arg5[%c0_46, %c0_47], %159 {strides = array<i32>} : memref<2x128xf32, #tpu.memory_space<vmem>>, vector<2x128xf32>,
    return
  }
  func.func @transform_0(%arg0: i32) -> (i32, i32, i32) {
    %c0_i32 = arith.constant 0 : i32
    %c0_i32_0 = arith.constant 0 : i32
    %c0_i32_1 = arith.constant 0 : i32
    return %c0_i32, %arg0, %c0_i32_0 : i32, i32, i32
  }
  func.func @transform_1(%arg0: i32) -> (i32, i32) {
    %c0_i32 = arith.constant 0 : i32
    %c0_i32_0 = arith.constant 0 : i32
    %c0_i32_1 = arith.constant 0 : i32
    return %c0_i32, %c0_i32_0 : i32, i32
  }
  func.func @transform_2(%arg0: i32) -> (i32, i32) {
    %c0_i32 = arith.constant 0 : i32
    %c0_i32_0 = arith.constant 0 : i32
    %c0_i32_1 = arith.constant 0 : i32
    return %c0_i32, %c0_i32_0 : i32, i32
  }
  func.func @transform_3(%arg0: i32) -> (i32, i32) {
    %c0_i32 = arith.constant 0 : i32
    %c0_i32_0 = arith.constant 0 : i32
    %c0_i32_1 = arith.constant 0 : i32
    return %c0_i32, %c0_i32_0 : i32, i32
  }
  func.func @transform_4(%arg0: i32) -> (i32, i32) {
    %c0_i32 = arith.constant 0 : i32
    %c0_i32_0 = arith.constant 0 : i32
    return %arg0, %c0_i32 : i32, i32
  }
}

</mosaic_0001>

<bundles_post_ra>
// kernel: gru_forward.1
= control target key start
LH: loop header
LB: loop body
LE: loop exit
PB: predicated region body
PF: predicated region fallthrough
CT: control target
= control target key end

     0   :  { %v978_v2 = vmov 0   ;;  %s1298_s0 = inlined_call_operand.vmem [shape: f32[8,2,256], index: 0, kind: input, shape index: {}]   ;;  %s1299_s1 = inlined_call_operand.vmem [shape: bf16[128,256], index: 1, kind: input, shape index: {}]   ;;  %s1300_s2 = inlined_call_operand.vmem [shape: bf16[128,128], index: 2, kind: input, shape index: {}]   ;;  %s1301_s3 = inlined_call_operand.vmem [shape: f32[1,128], index: 3, kind: input, shape index: {}]   ;;  %s1302_s4 = inlined_call_operand.hbm [shape: f32[2,128], index: 4, kind: output, shape index: {}]  }
   0x1   :  { %v1011_v0 = vld [vmem:[%s1299_s1 + $0x4] ss:$8 sps:$4 sm:$0xff]   ;;  %v1016_v1 = vld [vmem:[%s1299_s1] ss:$8 sps:$4 sm:$0xff]   ;;  %148 = vmatprep.mubr.bf16.mxu0 %v978_v2  ;;  %218 = vmatprep.mubr.bf16.mxu1 %v978_v2  ;;  %v1024_v3 = vld [vmem:[%s1299_s1 + $0x14] ss:$8 sps:$4 sm:$0xff]  }
   0x2   :  { %116 = vmatprep.subr.bf16.mxu0 %v1011_v0  ;;  %186 = vmatprep.subr.bf16.mxu1 %v1011_v0  ;;  %v1031_v4 = vld [vmem:[%s1299_s1 + $0x10] ss:$8 sps:$4 sm:$0xff]   ;;  %v1038_v5 = vld [vmem:[%s1299_s1 + $0x24] ss:$8 sps:$4 sm:$0xff]   ;;  %v1045_v6 = vld [vmem:[%s1299_s1 + $0x20] ss:$8 sps:$4 sm:$0xff]  }
   0x3   :  { %117 = vmatpush1.bf16.msra.mxu0 %v1016_v1  ;;  %187 = vmatpush1.bf16.msra.mxu1 %v1016_v1  ;;  %v1052_v7 = vld [vmem:[%s1299_s1 + $0x34] ss:$8 sps:$4 sm:$0xff]   ;;  %v1058_v8 = vld [vmem:[%s1299_s1 + $0x30] ss:$8 sps:$4 sm:$0xff]   ;;  %v1063_v9 = vld [vmem:[%s1299_s1 + $0x44] ss:$8 sps:$4 sm:$0xff]  }
   0x4   :  { %118 = vmatprep.subr.bf16.mxu0 %v1024_v3  ;;  %188 = vmatprep.subr.bf16.mxu1 %v1024_v3  ;;  %v1072_v10 = vld [vmem:[%s1299_s1 + $0x40] ss:$8 sps:$4 sm:$0xff]   ;;  %v1080_v11 = vld [vmem:[%s1299_s1 + $0x54] ss:$8 sps:$4 sm:$0xff]  }
   0x7   :  { %119 = vmatpush1.bf16.msra.mxu0 %v1031_v4  ;;  %189 = vmatpush1.bf16.msra.mxu1 %v1031_v4 }
   0x8   :  { %120 = vmatprep.subr.bf16.mxu0 %v1038_v5  ;;  %190 = vmatprep.subr.bf16.mxu1 %v1038_v5 }
   0xb   :  { %121 = vmatpush1.bf16.msra.mxu0 %v1045_v6  ;;  %191 = vmatpush1.bf16.msra.mxu1 %v1045_v6 }
   0xc   :  { %122 = vmatprep.subr.bf16.mxu0 %v1052_v7  ;;  %192 = vmatprep.subr.bf16.mxu1 %v1052_v7 }
   0xf   :  { %123 = vmatpush1.bf16.msra.mxu0 %v1058_v8  ;;  %193 = vmatpush1.bf16.msra.mxu1 %v1058_v8 }
  0x10   :  { %124 = vmatprep.subr.bf16.mxu0 %v1063_v9  ;;  %194 = vmatprep.subr.bf16.mxu1 %v1063_v9 }
  0x11   :  { %9 = vsyncpa [#allocation3], 0  ;;  %v1087_v12 = vld [vmem:[%s1299_s1 + $0x50] ss:$8 sps:$4 sm:$0xff]   ;;  %v1094_v13 = vld [vmem:[%s1299_s1 + $0x64] ss:$8 sps:$4 sm:$0xff]   ;;  %v163_v19 = vlaneseq }
  0x12   :  { %v1101_v14 = vld [vmem:[%s1299_s1 + $0x60] ss:$8 sps:$4 sm:$0xff]   ;;  %v1108_v15 = vld [vmem:[%s1299_s1 + $0x74] ss:$8 sps:$4 sm:$0xff]   ;;  %v1115_v16 = vld [vmem:[%s1299_s1 + $0x70] ss:$8 sps:$4 sm:$0xff]  }
  0x13   :  { %125 = vmatpush1.bf16.msra.mxu0 %v1072_v10  ;;  %195 = vmatpush1.bf16.msra.mxu1 %v1072_v10  ;;  %v979_v17 = vmov 1983009808   ;;  %v164_v21 = vshrl.u32 %v163_v19, 7  ;;  %v35_v27 = vld [vmem:[%s1298_s0] sm:$0xf]  ;;  %vm981_vm0 = vmmov 0  }
  0x14   :  { %126 = vmatprep.subr.bf16.mxu0 %v1080_v11  ;;  %196 = vmatprep.subr.bf16.mxu1 %v1080_v11  ;;  %v161_v18 = vunpack.c.l.s4 %v979_v17  ;;  %v817_v46 = vld [vmem:[%s1298_s0 + $0x4] sm:$0xf]  ;;  %s982_s25 = smov [#allocation2]  }
  0x15   :  { %s792_s26 = sshll.u32 %s982_s25, 4  ;;  %s793_s26 = int_to_ptr.vmem [resolvable:$true] %s792_s26 }
  0x16   :  { %v162_v20 = vunpack.c.0.s8 %v161_v18  ;;  %v819_v18 = vld [vmem:[%s1298_s0 + $0x8] sm:$0xf]  ;;  %s954_s27 = scalar_lea.vmem %s793_s26, 32  ;;  %p959_p1 = scmp.lt.s32.totalorder %s793_s26, %s793_s26 }
  0x17   :  { %127 = vmatpush1.bf16.msra.mxu0 %v1087_v12  ;;  %197 = vmatpush1.bf16.msra.mxu1 %v1087_v12  ;;  %p955_p0 = scmp.ne.s32.totalorder %s793_s26, %s954_s27  ;;  %p960_p2 = scmp.lt.s32.totalorder %s954_s27, %s954_s27 }
  0x18   :  { %128 = vmatprep.subr.bf16.mxu0 %v1094_v13  ;;  %198 = vmatprep.subr.bf16.mxu1 %v1094_v13  ;;  %v1142_v23 = vsub.s32 %v162_v20, %v164_v21 }
  0x19   :  { %p961_p3 = por %p960_p2, %p959_p1 }
  0x1b   :  { %129 = vmatpush1.bf16.msra.mxu0 %v1101_v14  ;;  %199 = vmatpush1.bf16.msra.mxu1 %v1101_v14  ;;  %p962_p4 = pnand %p961_p3, %p955_p0 }
  0x1c   :  { %130 = vmatprep.subr.bf16.mxu0 %v1108_v15  ;;  %200 = vmatprep.subr.bf16.mxu1 %v1108_v15 }
  0x1f   :  { %131 = vmatpush1.bf16.msra.mxu0 %v1115_v16  ;;  %201 = vmatpush1.bf16.msra.mxu1 %v1115_v16 }
  0x20   :  { %256 = vmatprep.subr.bf16.mxu0 %v1011_v0  ;;  %326 = vmatprep.subr.bf16.mxu1 %v1011_v0 }
  0x22   :  { %149 = vmatmul.mubr.bf16.vlgmr.msra.gmra.mrb[0].mxu0 %v978_v2 }
  0x23   :  { %257 = vmatpush1.bf16.msra.mxu0 %v1016_v1  ;;  %288 = vmatprep.mubr.bf16.mxu0 %v978_v2 }
  0x24   :  { %258 = vmatprep.subr.bf16.mxu0 %v1024_v3 }
  0x27   :  { %259 = vmatpush1.bf16.msra.mxu0 %v1031_v4 }
  0x28   :  { %260 = vmatprep.subr.bf16.mxu0 %v1038_v5 }
  0x2b   :  { %261 = vmatpush1.bf16.msra.mxu0 %v1045_v6 }
  0x2c   :  { %262 = vmatprep.subr.bf16.mxu0 %v1052_v7 }
  0x2f   :  { %263 = vmatpush1.bf16.msra.mxu0 %v1058_v8 }
  0x30   :  { %264 = vmatprep.subr.bf16.mxu0 %v1063_v9 }
  0x33   :  { %265 = vmatpush1.bf16.msra.mxu0 %v1072_v10 }
  0x34   :  { %266 = vmatprep.subr.bf16.mxu0 %v1080_v11 }
  0x37   :  { %267 = vmatpush1.bf16.msra.mxu0 %v1087_v12 }
  0x38   :  { %268 = vmatprep.subr.bf16.mxu0 %v1094_v13 }
  0x3b   :  { %269 = vmatpush1.bf16.msra.mxu0 %v1101_v14 }
  0x3c   :  { %270 = vmatprep.subr.bf16.mxu0 %v1108_v15 }
  0x3f   :  { %271 = vmatpush1.bf16.msra.mxu0 %v1115_v16 }
  0x40   :  { %396 = vmatprep.subr.bf16.mxu0 %v1011_v0 }
  0xf5   :  { %v150_v22 = vpop.f32.mrb[0].mxu0 }
  0xf6   :  { %v152_v24 = vpop.f32.mrb[1].mxu0 }
  0xf7   :  { %v159_v25 = vcombine.low %v150_v22, %v152_v24  ;;  %v154_v26 = vpop.f32.mrb[2].mxu0 }
  0xf8   :  { %v155_v28 = vpop.f32.mrb[3].mxu0 }
  0xf9   :  { %v166_v29 = vrot.slane %v159_v25, %v1142_v23 }
  0xfb   :  { %v168_v30 = vadd.f32 %v166_v29, %v35_v27 }
  0xfd   :  { %v816_v31 = vmul.f32 -1.442695, %v168_v30  ;;  %v176_v34 = vrot.slane %v168_v30, 2 }
  0xff   :  { %906 = vpow2.f32 %v816_v31 }
 0x109   :  { %v907_v32 = vpop.eup %906 }
 0x10a   :  { %v172_v33 = vadd.f32 1.0, %v907_v32 }
 0x10c   :  { %908 = vrcp.f32 %v172_v33 }
 0x10d   :  { %910 = vtanh.f32 %v176_v34 }
 0x116   :  { %v909_v35 = vpop.eup %908 }
 0x117   :  { %v179_v36 = vsub.f32 1.0, %v909_v35  ;;  %v911_v37 = vpop.eup %910 }
 0x118   :  { %v181_v39 = vmul.f32 %v911_v37, %v909_v35 }
 0x119   :  { %v180_v38 = vmul.f32 0.0, %v179_v36 }
 0x11b   :  { %v182_v40 = vadd.f32 %v181_v39, %v180_v38  ;;  %v821_v38 = vld [vmem:[%s1298_s0 + $0xc] sm:$0xf] }
 0x11d   :  { %v185_v41 = vpack.c.bf16 %v182_v40, %v182_v40 }
 0x11f   :  { %219 = vmatmul.mubr.bf16.vlgmr.msra.gmra.mrb[0].mxu1 %v185_v41 }
 0x120   :  { %327 = vmatpush1.bf16.msra.mxu1 %v1016_v1  ;;  %358 = vmatprep.mubr.bf16.mxu1 %v978_v2 }
 0x121   :  { %328 = vmatprep.subr.bf16.mxu1 %v1024_v3 }
 0x124   :  { %329 = vmatpush1.bf16.msra.mxu1 %v1031_v4 }
 0x125   :  { %330 = vmatprep.subr.bf16.mxu1 %v1038_v5 }
 0x128   :  { %331 = vmatpush1.bf16.msra.mxu1 %v1045_v6 }
 0x129   :  { %332 = vmatprep.subr.bf16.mxu1 %v1052_v7 }
 0x12c   :  { %333 = vmatpush1.bf16.msra.mxu1 %v1058_v8 }
 0x12d   :  { %334 = vmatprep.subr.bf16.mxu1 %v1063_v9 }
 0x130   :  { %335 = vmatpush1.bf16.msra.mxu1 %v1072_v10 }
 0x131   :  { %336 = vmatprep.subr.bf16.mxu1 %v1080_v11 }
 0x134   :  { %337 = vmatpush1.bf16.msra.mxu1 %v1087_v12 }
 0x135   :  { %338 = vmatprep.subr.bf16.mxu1 %v1094_v13 }
 0x138   :  { %339 = vmatpush1.bf16.msra.mxu1 %v1101_v14 }
 0x139   :  { %340 = vmatprep.subr.bf16.mxu1 %v1108_v15 }
 0x13c   :  { %341 = vmatpush1.bf16.msra.mxu1 %v1115_v16 }
 0x13d   :  { %466 = vmatprep.subr.bf16.mxu1 %v1011_v0 }
 0x1f2   :  { %v220_v42 = vpop.f32.mrb[0].mxu1 }
 0x1f3   :  { %v222_v43 = vpop.f32.mrb[1].mxu1 }
 0x1f4   :  { %v229_v44 = vcombine.low %v220_v42, %v222_v43  ;;  %v224_v45 = vpop.f32.mrb[2].mxu1 }
 0x1f5   :  { %v225_v47 = vpop.f32.mrb[3].mxu1 }
 0x1f6   :  { %v236_v48 = vrot.slane %v229_v44, %v1142_v23 }
 0x1f8   :  { %v238_v49 = vadd.f32 %v817_v46, %v236_v48 }
 0x1fa   :  { %v818_v50 = vmul.f32 -1.442695, %v238_v49  ;;  %v246_v53 = vrot.slane %v238_v49, 2 }
 0x1fc   :  { %912 = vpow2.f32 %v818_v50 }
 0x206   :  { %v913_v51 = vpop.eup %912 }
 0x207   :  { %v242_v52 = vadd.f32 1.0, %v913_v51 }
 0x209   :  { %914 = vrcp.f32 %v242_v52 }
 0x20a   :  { %916 = vtanh.f32 %v246_v53 }
 0x213   :  { %v915_v54 = vpop.eup %914 }
 0x214   :  { %v249_v55 = vsub.f32 1.0, %v915_v54  ;;  %v917_v56 = vpop.eup %916 }
 0x215   :  { %v251_v58 = vmul.f32 %v917_v56, %v915_v54  ;;  %v823_v56 = vld [vmem:[%s1298_s0 + $0x10] sm:$0xf] }
 0x216   :  { %v250_v57 = vmul.f32 %v249_v55, %v182_v40 }
 0x218   :  { %v252_v59 = vadd.f32 %v251_v58, %v250_v57 }
 0x21a   :  { %v255_v60 = vpack.c.bf16 %v252_v59, %v252_v59 }
 0x21c   :  { %289 = vmatmul.mubr.bf16.vlgmr.msra.gmra.mrb[4].mxu0 %v255_v60 }
 0x21d   :  { %397 = vmatpush1.bf16.msra.mxu0 %v1016_v1  ;;  %428 = vmatprep.mubr.bf16.mxu0 %v978_v2 }
 0x21e   :  { %398 = vmatprep.subr.bf16.mxu0 %v1024_v3 }
 0x221   :  { %399 = vmatpush1.bf16.msra.mxu0 %v1031_v4 }
 0x222   :  { %400 = vmatprep.subr.bf16.mxu0 %v1038_v5 }
 0x225   :  { %401 = vmatpush1.bf16.msra.mxu0 %v1045_v6 }
 0x226   :  { %402 = vmatprep.subr.bf16.mxu0 %v1052_v7 }
 0x229   :  { %403 = vmatpush1.bf16.msra.mxu0 %v1058_v8 }
 0x22a   :  { %404 = vmatprep.subr.bf16.mxu0 %v1063_v9 }
 0x22d   :  { %405 = vmatpush1.bf16.msra.mxu0 %v1072_v10 }
 0x22e   :  { %406 = vmatprep.subr.bf16.mxu0 %v1080_v11 }
 0x231   :  { %407 = vmatpush1.bf16.msra.mxu0 %v1087_v12 }
 0x232   :  { %408 = vmatprep.subr.bf16.mxu0 %v1094_v13 }
 0x235   :  { %409 = vmatpush1.bf16.msra.mxu0 %v1101_v14 }
 0x236   :  { %410 = vmatprep.subr.bf16.mxu0 %v1108_v15 }
 0x239   :  { %411 = vmatpush1.bf16.msra.mxu0 %v1115_v16 }
 0x23a   :  { %536 = vmatprep.subr.bf16.mxu0 %v1011_v0 }
 0x2ef   :  { %v290_v61 = vpop.f32.mrb[4].mxu0 }
 0x2f0   :  { %v292_v62 = vpop.f32.mrb[5].mxu0 }
 0x2f1   :  { %v299_v63 = vcombine.low %v290_v61, %v292_v62  ;;  %v294_v17 = vpop.f32.mrb[6].mxu0 }
 0x2f2   :  { %v295_v19 = vpop.f32.mrb[7].mxu0 }
 0x2f3   :  { %v306_v20 = vrot.slane %v299_v63, %v1142_v23 }
 0x2f5   :  { %v308_v21 = vadd.f32 %v819_v18, %v306_v20 }
 0x2f7   :  { %v820_v22 = vmul.f32 -1.442695, %v308_v21  ;;  %v316_v26 = vrot.slane %v308_v21, 2 }
 0x2f9   :  { %918 = vpow2.f32 %v820_v22 }
 0x303   :  { %v919_v24 = vpop.eup %918 }
 0x304   :  { %v312_v25 = vadd.f32 1.0, %v919_v24 }
 0x306   :  { %920 = vrcp.f32 %v312_v25 }
 0x307   :  { %922 = vtanh.f32 %v316_v26 }
 0x310   :  { %v921_v27 = vpop.eup %920 }
 0x311   :  { %v319_v28 = vsub.f32 1.0, %v921_v27  ;;  %v923_v29 = vpop.eup %922 }
 0x312   :  { %v321_v31 = vmul.f32 %v923_v29, %v921_v27 }
 0x313   :  { %v320_v30 = vmul.f32 %v319_v28, %v252_v59 }
 0x315   :  { %v322_v32 = vadd.f32 %v321_v31, %v320_v30 }
 0x317   :  { %v325_v33 = vpack.c.bf16 %v322_v32, %v322_v32 }
 0x319   :  { %359 = vmatmul.mubr.bf16.vlgmr.msra.gmra.mrb[4].mxu1 %v325_v33 }
 0x31a   :  { %467 = vmatpush1.bf16.msra.mxu1 %v1016_v1  ;;  %498 = vmatprep.mubr.bf16.mxu1 %v978_v2 }
 0x31b   :  { %468 = vmatprep.subr.bf16.mxu1 %v1024_v3 }
 0x31e   :  { %469 = vmatpush1.bf16.msra.mxu1 %v1031_v4 }
 0x31f   :  { %470 = vmatprep.subr.bf16.mxu1 %v1038_v5 }
 0x322   :  { %471 = vmatpush1.bf16.msra.mxu1 %v1045_v6 }
 0x323   :  { %472 = vmatprep.subr.bf16.mxu1 %v1052_v7 }
 0x326   :  { %473 = vmatpush1.bf16.msra.mxu1 %v1058_v8 }
 0x327   :  { %474 = vmatprep.subr.bf16.mxu1 %v1063_v9 }
 0x32a   :  { %475 = vmatpush1.bf16.msra.mxu1 %v1072_v10 }
 0x32b   :  { %476 = vmatprep.subr.bf16.mxu1 %v1080_v11 }
 0x32e   :  { %477 = vmatpush1.bf16.msra.mxu1 %v1087_v12 }
 0x32f   :  { %478 = vmatprep.subr.bf16.mxu1 %v1094_v13 }
 0x332   :  { %479 = vmatpush1.bf16.msra.mxu1 %v1101_v14 }
 0x333   :  { %480 = vmatprep.subr.bf16.mxu1 %v1108_v15 }
 0x336   :  { %481 = vmatpush1.bf16.msra.mxu1 %v1115_v16 }
 0x337   :  { %606 = vmatprep.subr.bf16.mxu1 %v1011_v0 }
 0x3ec   :  { %v360_v34 = vpop.f32.mrb[4].mxu1 }
 0x3ed   :  { %v362_v35 = vpop.f32.mrb[5].mxu1 }
 0x3ee   :  { %v369_v36 = vcombine.low %v360_v34, %v362_v35  ;;  %v364_v37 = vpop.f32.mrb[6].mxu1 }
 0x3ef   :  { %v365_v39 = vpop.f32.mrb[7].mxu1 }
 0x3f0   :  { %v376_v40 = vrot.slane %v369_v36, %v1142_v23 }
 0x3f2   :  { %v378_v41 = vadd.f32 %v821_v38, %v376_v40 }
 0x3f4   :  { %v822_v42 = vmul.f32 -1.442695, %v378_v41  ;;  %v386_v45 = vrot.slane %v378_v41, 2 }
 0x3f6   :  { %924 = vpow2.f32 %v822_v42 }
 0x400   :  { %v925_v43 = vpop.eup %924 }
 0x401   :  { %v382_v44 = vadd.f32 1.0, %v925_v43 }
 0x403   :  { %926 = vrcp.f32 %v382_v44 }
 0x404   :  { %928 = vtanh.f32 %v386_v45 }
 0x40d   :  { %v927_v0 = vpop.eup %926 }
 0x40e   :  { %v389_v46 = vsub.f32 1.0, %v927_v0  ;;  %v929_v47 = vpop.eup %928 }
 0x40f   :  { %v391_v49 = vmul.f32 %v929_v47, %v927_v0  ;;  %v980_v47 = vmov 0.0  }
 0x410   :  { %v390_v48 = vmul.f32 %v389_v46, %v322_v32  ;;  %v827_v32 = vld [vmem:[%s1298_s0 + $0x18] sm:$0xf]  ;;  %v898_v46 = vld [vmem:[%s1300_s2] sm:$0xff]  }
 0x412   :  { %v392_v50 = vadd.f32 %v391_v49, %v390_v48  ;;  %v899_v48 = vld [vmem:[%s1300_s2 + $0x8] sm:$0xff]   ;;  %v900_v49 = vld [vmem:[%s1300_s2 + $0x10] sm:$0xff]  }
 0x414   :  { %v395_v51 = vpack.c.bf16 %v392_v50, %v392_v50 }
 0x416   :  { %429 = vmatmul.mubr.bf16.vlgmr.msra.gmra.mrb[8].mxu0 %v395_v51  ;;  %v902_v51 = vld [vmem:[%s1300_s2 + $0x20] sm:$0xff]  }
 0x417   :  { %537 = vmatpush1.bf16.msra.mxu0 %v1016_v1  ;;  %568 = vmatprep.mubr.bf16.mxu0 %v978_v2 }
 0x418   :  { %538 = vmatprep.subr.bf16.mxu0 %v1024_v3 }
 0x41b   :  { %539 = vmatpush1.bf16.msra.mxu0 %v1031_v4 }
 0x41c   :  { %540 = vmatprep.subr.bf16.mxu0 %v1038_v5 }
 0x41f   :  { %541 = vmatpush1.bf16.msra.mxu0 %v1045_v6 }
 0x420   :  { %542 = vmatprep.subr.bf16.mxu0 %v1052_v7 }
 0x423   :  { %543 = vmatpush1.bf16.msra.mxu0 %v1058_v8 }
 0x424   :  { %544 = vmatprep.subr.bf16.mxu0 %v1063_v9 }
 0x427   :  { %545 = vmatpush1.bf16.msra.mxu0 %v1072_v10 }
 0x428   :  { %546 = vmatprep.subr.bf16.mxu0 %v1080_v11 }
 0x42b   :  { %547 = vmatpush1.bf16.msra.mxu0 %v1087_v12 }
 0x42c   :  { %548 = vmatprep.subr.bf16.mxu0 %v1094_v13 }
 0x42f   :  { %549 = vmatpush1.bf16.msra.mxu0 %v1101_v14 }
 0x430   :  { %550 = vmatprep.subr.bf16.mxu0 %v1108_v15 }
 0x433   :  { %551 = vmatpush1.bf16.msra.mxu0 %v1115_v16 }
 0x434   :  { %849 = vmatprep.subr.bf16.mxu0 %v980_v47 }
 0x4e9   :  { %v430_v52 = vpop.f32.mrb[8].mxu0 }
 0x4ea   :  { %v432_v53 = vpop.f32.mrb[9].mxu0 }
 0x4eb   :  { %v439_v54 = vcombine.low %v430_v52, %v432_v53  ;;  %v434_v55 = vpop.f32.mrb[10].mxu0  ;;  %v903_v52 = vld [vmem:[%s1300_s2 + $0x28] sm:$0xff]   ;;  %v904_v53 = vld [vmem:[%s1300_s2 + $0x30] sm:$0xff]  }
 0x4ec   :  { %v435_v57 = vpop.f32.mrb[11].mxu0 }
 0x4ed   :  { %v446_v58 = vrot.slane %v439_v54, %v1142_v23  ;;  %v905_v54 = vld [vmem:[%s1300_s2 + $0x38] sm:$0xff]  }
 0x4ef   :  { %v448_v59 = vadd.f32 %v823_v56, %v446_v58 }
 0x4f1   :  { %v824_v60 = vmul.f32 -1.442695, %v448_v59  ;;  %v456_v63 = vrot.slane %v448_v59, 2  ;;  %v829_v59 = vld [vmem:[%s1298_s0 + $0x1c] sm:$0xf] }
 0x4f3   :  { %930 = vpow2.f32 %v824_v60 }
 0x4fd   :  { %v931_v61 = vpop.eup %930 }
 0x4fe   :  { %v452_v62 = vadd.f32 1.0, %v931_v61 }
 0x500   :  { %932 = vrcp.f32 %v452_v62 }
 0x501   :  { %934 = vtanh.f32 %v456_v63 }
 0x50a   :  { %v933_v17 = vpop.eup %932 }
 0x50b   :  { %v459_v18 = vsub.f32 1.0, %v933_v17  ;;  %v935_v19 = vpop.eup %934 }
 0x50c   :  { %v461_v21 = vmul.f32 %v935_v19, %v933_v17 }
 0x50d   :  { %v460_v20 = vmul.f32 %v459_v18, %v392_v50  ;;  %v901_v50 = vld [vmem:[%s1300_s2 + $0x18] sm:$0xff]  }
 0x50f   :  { %v462_v22 = vadd.f32 %v461_v21, %v460_v20 }
 0x511   :  { %v465_v24 = vpack.c.bf16 %v462_v22, %v462_v22 }
 0x513   :  { %499 = vmatmul.mubr.bf16.vlgmr.msra.gmra.mrb[8].mxu1 %v465_v24 }
 0x514   :  { %607 = vmatpush1.bf16.msra.mxu1 %v1016_v1  ;;  %638 = vmatprep.mubr.bf16.mxu1 %v978_v2 }
 0x515   :  { %608 = vmatprep.subr.bf16.mxu1 %v1024_v3 }
 0x518   :  { %609 = vmatpush1.bf16.msra.mxu1 %v1031_v4 }
 0x519   :  { %610 = vmatprep.subr.bf16.mxu1 %v1038_v5  ;;  %v825_v5 = vld [vmem:[%s1298_s0 + $0x14] sm:$0xf] }
 0x51c   :  { %611 = vmatpush1.bf16.msra.mxu1 %v1045_v6 }
 0x51d   :  { %612 = vmatprep.subr.bf16.mxu1 %v1052_v7 }
 0x520   :  { %613 = vmatpush1.bf16.msra.mxu1 %v1058_v8 }
 0x521   :  { %614 = vmatprep.subr.bf16.mxu1 %v1063_v9 }
 0x524   :  { %615 = vmatpush1.bf16.msra.mxu1 %v1072_v10 }
 0x525   :  { %616 = vmatprep.subr.bf16.mxu1 %v1080_v11 }
 0x528   :  { %617 = vmatpush1.bf16.msra.mxu1 %v1087_v12 }
 0x529   :  { %618 = vmatprep.subr.bf16.mxu1 %v1094_v13 }
 0x52c   :  { %619 = vmatpush1.bf16.msra.mxu1 %v1101_v14 }
 0x52d   :  { %620 = vmatprep.subr.bf16.mxu1 %v1108_v15 }
 0x530   :  { %621 = vmatpush1.bf16.msra.mxu1 %v1115_v16 }
 0x5e6   :  { %v500_v1 = vpop.f32.mrb[8].mxu1 }
 0x5e7   :  { %v502_v2 = vpop.f32.mrb[9].mxu1 }
 0x5e8   :  { %v509_v3 = vcombine.low %v500_v1, %v502_v2  ;;  %v504_v4 = vpop.f32.mrb[10].mxu1 }
 0x5e9   :  { %v505_v6 = vpop.f32.mrb[11].mxu1 }
 0x5ea   :  { %v516_v7 = vrot.slane %v509_v3, %v1142_v23 }
 0x5ec   :  { %v518_v8 = vadd.f32 %v825_v5, %v516_v7 }
 0x5ee   :  { %v826_v9 = vmul.f32 -1.442695, %v518_v8  ;;  %v526_v12 = vrot.slane %v518_v8, 2 }
 0x5f0   :  { %936 = vpow2.f32 %v826_v9 }
 0x5fa   :  { %v937_v10 = vpop.eup %936 }
 0x5fb   :  { %v522_v11 = vadd.f32 1.0, %v937_v10 }
 0x5fd   :  { %938 = vrcp.f32 %v522_v11 }
 0x5fe   :  { %940 = vtanh.f32 %v526_v12 }
 0x607   :  { %v939_v13 = vpop.eup %938 }
 0x608   :  { %v529_v14 = vsub.f32 1.0, %v939_v13  ;;  %v941_v15 = vpop.eup %940 }
 0x609   :  { %v531_v25 = vmul.f32 %v941_v15, %v939_v13 }
 0x60a   :  { %v530_v16 = vmul.f32 %v529_v14, %v462_v22 }
 0x60c   :  { %v532_v26 = vadd.f32 %v531_v25, %v530_v16 }
 0x60e   :  { %v535_v27 = vpack.c.bf16 %v532_v26, %v532_v26 }
 0x610   :  { %569 = vmatmul.mubr.bf16.vlgmr.msra.gmra.mrb[12].mxu0 %v535_v27 }
 0x611   :  { %850 = vmatpush3.bf16.msra.mxu0 %v898_v46  ;;  %865 = vmatprep.mubr.msk.bf16.mxu0 %vm981_vm0, %v980_v47 }
 0x612   :  { %851 = vmatprep.subr.bf16.mxu0 %v980_v47 }
 0x615   :  { %852 = vmatpush3.bf16.msra.mxu0 %v899_v48 }
 0x616   :  { %853 = vmatprep.subr.bf16.mxu0 %v980_v47 }
 0x619   :  { %854 = vmatpush3.bf16.msra.mxu0 %v900_v49 }
 0x61a   :  { %855 = vmatprep.subr.bf16.mxu0 %v980_v47 }
 0x61d   :  { %856 = vmatpush3.bf16.msra.mxu0 %v901_v50 }
 0x61e   :  { %857 = vmatprep.subr.bf16.mxu0 %v980_v47 }
 0x621   :  { %858 = vmatpush3.bf16.msra.mxu0 %v902_v51 }
 0x622   :  { %859 = vmatprep.subr.bf16.mxu0 %v980_v47 }
 0x625   :  { %860 = vmatpush3.bf16.msra.mxu0 %v903_v52 }
 0x626   :  { %861 = vmatprep.subr.bf16.mxu0 %v980_v47 }
 0x629   :  { %862 = vmatpush3.bf16.msra.mxu0 %v904_v53 }
 0x62a   :  { %863 = vmatprep.subr.bf16.mxu0 %v980_v47 }
 0x62d   :  { %864 = vmatpush3.bf16.msra.mxu0 %v905_v54 }
 0x6e3   :  { %v570_v28 = vpop.f32.mrb[12].mxu0 }
 0x6e4   :  { %v572_v29 = vpop.f32.mrb[13].mxu0 }
 0x6e5   :  { %v579_v30 = vcombine.low %v570_v28, %v572_v29  ;;  %v574_v31 = vpop.f32.mrb[14].mxu0 }
 0x6e6   :  { %v575_v33 = vpop.f32.mrb[15].mxu0 }
 0x6e7   :  { %v586_v34 = vrot.slane %v579_v30, %v1142_v23 }
 0x6e9   :  { %v588_v35 = vadd.f32 %v827_v32, %v586_v34 }
 0x6eb   :  { %v828_v36 = vmul.f32 -1.442695, %v588_v35  ;;  %v596_v39 = vrot.slane %v588_v35, 2 }
 0x6ed   :  { %942 = vpow2.f32 %v828_v36 }
 0x6f7   :  { %v943_v37 = vpop.eup %942 }
 0x6f8   :  { %v592_v38 = vadd.f32 1.0, %v943_v37 }
 0x6fa   :  { %944 = vrcp.f32 %v592_v38 }
 0x6fb   :  { %946 = vtanh.f32 %v596_v39 }
 0x704   :  { %v945_v40 = vpop.eup %944 }
 0x705   :  { %v599_v41 = vsub.f32 1.0, %v945_v40  ;;  %v947_v42 = vpop.eup %946 }
 0x706   :  { %v601_v44 = vmul.f32 %v947_v42, %v945_v40 }
 0x707   :  { %v600_v43 = vmul.f32 %v599_v41, %v532_v26 }
 0x709   :  { %v602_v45 = vadd.f32 %v601_v44, %v600_v43 }
 0x70b   :  { %v605_v0 = vpack.c.bf16 %v602_v45, %v602_v45 }
 0x70d   :  { %639 = vmatmul.mubr.bf16.vlgmr.msra.gmra.mrb[12].mxu1 %v605_v0 }
 0x7e0   :  { %v640_v55 = vpop.f32.mrb[12].mxu1 }
 0x7e1   :  { %v642_v56 = vpop.f32.mrb[13].mxu1 }
 0x7e2   :  { %v649_v57 = vcombine.low %v640_v55, %v642_v56  ;;  %v644_v58 = vpop.f32.mrb[14].mxu1 }
 0x7e3   :  { %v645_v60 = vpop.f32.mrb[15].mxu1 }
 0x7e4   :  { %v656_v61 = vrot.slane %v649_v57, %v1142_v23  ;;  %v831_v23 = vld [vmem:[%s1301_s3] ss:$0 sm:$0xff] }
 0x7e6   :  { %v658_v62 = vadd.f32 %v829_v59, %v656_v61 }
 0x7e8   :  { %v830_v63 = vmul.f32 -1.442695, %v658_v62  ;;  %v666_v19 = vrot.slane %v658_v62, 2 }
 0x7ea   :  { %948 = vpow2.f32 %v830_v63 }
 0x7f4   :  { %v949_v17 = vpop.eup %948 }
 0x7f5   :  { %v662_v18 = vadd.f32 1.0, %v949_v17 }
 0x7f7   :  { %950 = vrcp.f32 %v662_v18 }
 0x7f8   :  { %952 = vtanh.f32 %v666_v19 }
 0x801   :  { %v951_v20 = vpop.eup %950 }
 0x802   :  { %v669_v21 = vsub.f32 1.0, %v951_v20  ;;  %v953_v22 = vpop.eup %952 }
 0x803   :  { %v671_v1 = vmul.f32 %v953_v22, %v951_v20 }
 0x804   :  { %v670_v24 = vmul.f32 %v669_v21, %v602_v45 }
 0x806   :  { %v672_v2 = vadd.f32 %v671_v1, %v670_v24 }
 0x808   :  { %v673_v3 = vpack.c.bf16 %v672_v2, %v672_v2 }
 0x80a   :  { %866 = vmatmul.mubr.bf16.vlgmr.msra.gmra.mrb[16].mxu0 %v673_v3 }
 0x8dd   :  { %v779_v4 = vpop.f32.mrb[16].mxu0 }
 0x8de   :  { %v780_v5 = vadd.f32 %v831_v23, %v779_v4  ;;  %v867_v6 = vpop.f32.mrb[17].mxu0 }
 0x8df   :  { %v782_v7 = vpop.f32.mrb[18].mxu0 }
 0x8e0   :  { %785 = vst [vmem:[#allocation2] sm:$0x3] %v780_v5  ;;  %v868_v8 = vpop.f32.mrb[19].mxu0 }
 0x8e1   :  { %965 = shalt.err (!%p962_p4)
}
 0x8e2   :  { %s966_s3 = scalar_lea.hbm %s1302_s4, 32 }
 0x8e3   :  { %p967_p5 = scmp.ne.s32.totalorder %s1302_s4, %s966_s3  ;;  %p970_p6 = scmp.lt.u32.totalorder %s966_s3, %s1302_s4 }
 0x8e5   :  { %p972_p7 = pnand %p970_p6, %p967_p5 }
 0x8e7   :  { %975 = shalt.err (!%p972_p7)
}
 0x8e8   :  { %795 = dma.vmem_to_hbm [thread:$0]  %s793_s26, 32, %s1302_s4, [#allocation3]  }
 0x8e9   :  { %976 = dma.done.wait [#allocation3], 32  }
 0x8ea   :  { %977 = vsyncadd [#allocation3], 4294967264 }
 0x8eb   :  { %799 = vsyncpa [#allocation3], 1 }

</bundles_post_ra>
